<compile_context>
chip_gen: v6e
topology: v6e:2x2x1
jax: 0.10.0
libtpu: 0.0.40
codegen_flags: <defaults>
</compile_context>

<pallas_src>
import functools
import math

import jax
import jax.numpy as jnp
from jax import lax
from jax.experimental import pallas as pl
from jax.experimental.pallas import tpu as pltpu


def _mix32(x):
    """lowbias32 finalizer: well-avalanched uint32 hash (interpret-mode fallback)."""
    x = x ^ (x >> 16)
    x = x * jnp.uint32(0x7FEB352D)
    x = x ^ (x >> 15)
    x = x * jnp.uint32(0x846CA68B)
    x = x ^ (x >> 16)
    return x


def _ct_noiser_kernel(seed_ref, x_ref, o_ref, *, mean, std, block_rows, cols,
                      use_hw_prng, bf16_transcendentals):
    half = block_rows // 2
    pid = pl.program_id(0)

    if use_hw_prng:
        # Dedicated PRNG unit; per-tile seeding keeps tiles independent.
        pltpu.prng_seed(seed_ref[0], pid)
        bits = pltpu.bitcast(pltpu.prng_random_bits((block_rows, cols)),
                             jnp.uint32)
    else:
        # Counter-based lowbias32 hash fallback (interpret mode / CPU only).
        base = pid * jnp.int32(block_rows * cols)
        row = lax.broadcasted_iota(jnp.int32, (block_rows, cols), 0)
        col = lax.broadcasted_iota(jnp.int32, (block_rows, cols), 1)
        ctr = (row * jnp.int32(cols) + col + base).astype(jnp.uint32)
        seed = seed_ref[0].astype(jnp.uint32)
        bits = _mix32(ctr * jnp.uint32(0x9E3779B1) + seed * jnp.uint32(0x85EBCA77))

    # 23-bit uniforms strictly inside (0, 1): no clamp needed before log().
    scale = jnp.float32(1.0 / (1 << 23))
    off = jnp.float32(0.5 / (1 << 23))
    u1 = (bits[:half] >> 9).astype(jnp.int32).astype(jnp.float32) * scale + off
    u2 = (bits[half:] >> 9).astype(jnp.int32).astype(jnp.float32) * scale + off

    # Box-Muller: one log+sqrt+cos+sin per TWO outputs. bf16 transcendentals
    # on chips with a bf16 EUP (v6e/v7x); f32 elsewhere (v5e and older).
    ct = jnp.bfloat16 if bf16_transcendentals else jnp.float32
    u1c = u1.astype(ct)
    u2c = u2.astype(ct)
    r = jnp.sqrt(-2.0 * jnp.log(u1c))
    theta = (2.0 * math.pi) * u2c
    z0 = (r * jnp.cos(theta)).astype(jnp.float32)
    z1 = (r * jnp.sin(theta)).astype(jnp.float32)

    m = jnp.float32(mean)
    s = jnp.float32(std)
    # Two direct half-block stores: no concatenate / full-block VMEM temp.
    o_ref[:half] = (x_ref[:half].astype(jnp.float32) + (m + s * z0)).astype(o_ref.dtype)
    o_ref[half:] = (x_ref[half:].astype(jnp.float32) + (m + s * z1)).astype(o_ref.dtype)


def _pick_block_rows(rows, cols, block_bytes, itemsize):
    """Block sublane count: multiple of 16 (or full rows), divides rows, ~block_bytes."""
    if rows % 16 != 0:
        return rows                              # single full-height block (rows even)
    target = max(16, (block_bytes // (itemsize * cols)) // 16 * 16)
    br = min(rows, target)
    while rows % br != 0:
        br -= 16
    if br == rows and rows >= 32:                # keep >= 2 grid steps (v7x megacore)
        br = max(16, (rows // 2) // 16 * 16)
        while rows % br != 0:
            br -= 16
    return br


def _choose_layout(total, *, max_cols=1024, block_bytes=4 << 20, itemsize=4):
    """Returns (rows, cols, block_rows, padded_total). padded_total == total on the
    copy-free fast path; > total only for ragged sizes (pad+slice fallback)."""
    if total % 128 == 0:
        cands = []
        c = 128
        while c <= max_cols and total % c == 0:
            cands.append(c)
            c *= 2
        best = None
        for c in reversed(cands):                # biggest lane-dense cols, rows % 16 == 0
            if (total // c) % 16 == 0:
                best = c
                break
        if best is None:
            for c in reversed(cands):            # else even rows that fit one VMEM block
                r = total // c
                if r % 2 == 0 and r * c * itemsize <= block_bytes:
                    best = c
                    break
        if best is not None:
            rows = total // best
            return rows, best, _pick_block_rows(rows, best, block_bytes, itemsize), total

    # Ragged fallback: pad up to a (rows, cols) slab (one extra pad + slice pass).
    cols = max_cols if total >= max_cols else 128
    rows = (total + cols - 1) // cols
    rows = ((rows + 15) // 16) * 16
    return rows, cols, _pick_block_rows(rows, cols, block_bytes, itemsize), rows * cols


def ct_noiser(x, seed, mean, std, *, donate=False, use_hw_prng=None,
              bf16_transcendentals=None, max_cols=1024, block_bytes=4 << 20):
    """Adds N(mean, std) noise to x (any shape), matching CTNoiser.forward."""
    dev_kind = jax.devices()[0].device_kind.lower()
    if use_hw_prng is None:
        use_hw_prng = jax.devices()[0].platform == "tpu"
    if bf16_transcendentals is None:
        bf16_transcendentals = ("v6" in dev_kind) or ("v7" in dev_kind)

    orig_shape = x.shape
    total = int(x.size)
    rows, cols, br, padded = _choose_layout(
        total, max_cols=max_cols, block_bytes=block_bytes, itemsize=4)

    x_flat = x.reshape(-1)
    if padded != total:
        x_flat = jnp.pad(x_flat, (0, padded - total))
    x2 = x_flat.reshape(rows, cols)

    # TODO(synk): mean/std are baked in as compile-time constants; distinct
    #             (mean, std) pairs recompile (operational only, matches the
    #             module storing them at __init__).
    kernel = functools.partial(
        _ct_noiser_kernel, mean=float(mean), std=float(std),
        block_rows=br, cols=cols,
        use_hw_prng=use_hw_prng, bf16_transcendentals=bf16_transcendentals)

    nbytes = 2 * rows * cols * x.dtype.itemsize
    out2 = pl.pallas_call(
        kernel,
        out_shape=jax.ShapeDtypeStruct((rows, cols), x.dtype),
        grid_spec=pltpu.PrefetchScalarGridSpec(
            num_scalar_prefetch=1,                               # seed -> SMEM
            grid=(rows // br,),
            in_specs=[pl.BlockSpec((br, cols), lambda i, seed_ref: (i, 0))],
            out_specs=pl.BlockSpec((br, cols), lambda i, seed_ref: (i, 0)),
        ),
        compiler_params=pltpu.CompilerParams(
            dimension_semantics=("parallel",),    # megacore shards tiles (v7x)
            vmem_limit_bytes=32 * 1024 * 1024),   # ~16 MiB double-buffered in+out
        cost_estimate=pl.CostEstimate(
            flops=12 * rows * cols,
            transcendentals=2 * rows * cols,
            bytes_accessed=nbytes),
        # Alias x -> out only when the caller can donate x (saves the output alloc).
        input_output_aliases=({1: 0} if donate else {}),
    )(jnp.asarray([seed], dtype=jnp.int32), x2)

    if padded != total:
        return out2.reshape(-1)[:total].reshape(orig_shape)
    return out2.reshape(orig_shape)


if __name__ == "__main__":
    # "Parameters" of the noise distribution (module __init__ args).
    NOISE_MEAN = 0.0
    NOISE_STD = 5.0

    key = jax.random.PRNGKey(0)
    # CT-like input volume slice batch: NCHW
    x = 100.0 * jax.random.normal(key, (2, 4, 16, 16), dtype=jnp.float32)

    y = ct_noiser(x, seed=1234, mean=NOISE_MEAN, std=NOISE_STD)
    y = jax.block_until_ready(y)

    # Sanity checks: shape/dtype preserved, noise has roughly the right scale.
    assert y.shape == x.shape and y.dtype == x.dtype
    diff = y - x
    assert abs(float(jnp.mean(diff)) - NOISE_MEAN) < 1.0
    assert 0.5 * NOISE_STD < float(jnp.std(diff)) < 2.0 * NOISE_STD

    print("KERNEL_OK")
</pallas_src>

<mosaic_0001>
module attributes {stable_mosaic.version = 11 : i64} {
  func.func @_ct_noiser_kernel(%arg0: i32, %arg1: memref<1xi32, #tpu.memory_space<smem>>, %arg2: memref<16x128xf32, #tpu.memory_space<vmem>>, %arg3: memref<16x128xf32, #tpu.memory_space<vmem>>) attributes {dimension_semantics = [#tpu.dimension_semantics<parallel>], iteration_bounds = array<i64: 1>, scalar_prefetch = 1 : i64, scratch_operands = 0 : i64, tpu.core_type = #tpu.core_type<tc>, window_params = [{transform_indices = @transform_0, window_bounds = array<i64: 16, 128>}, {transform_indices = @transform_1, window_bounds = array<i64: 16, 128>}]} {
    %c2048_i32 = arith.constant 2048 : i32
    %0 = arith.muli %arg0, %c2048_i32 : i32
    %1 = tpu.iota {dimensions = array<i32: 0>} : vector<16x128xi32>
    %2 = tpu.iota {dimensions = array<i32: 1>} : vector<16x128xi32>
    %c128_i32 = arith.constant 128 : i32
    %3 = vector.broadcast %c128_i32 : i32 to vector<16x128xi32>
    %4 = arith.muli %1, %3 : vector<16x128xi32>
    %5 = arith.addi %4, %2 : vector<16x128xi32>
    %6 = vector.broadcast %0 : i32 to vector<16x128xi32>
    %7 = arith.addi %5, %6 : vector<16x128xi32>
    %c0 = arith.constant 0 : index
    %8 = memref.load %arg1[%c0] : memref<1xi32, #tpu.memory_space<smem>>
    %c-1640531535_i32 = arith.constant -1640531535 : i32
    %9 = vector.broadcast %c-1640531535_i32 : i32 to vector<16x128xi32>
    %10 = arith.muli %7, %9 : vector<16x128xi32>
    %c-2048144777_i32 = arith.constant -2048144777 : i32
    %11 = arith.muli %8, %c-2048144777_i32 : i32
    %12 = vector.broadcast %11 : i32 to vector<16x128xi32>
    %13 = arith.addi %10, %12 : vector<16x128xi32>
    %c16_i32 = arith.constant 16 : i32
    %14 = vector.broadcast %c16_i32 : i32 to vector<16x128xi32>
    %15 = arith.shrui %13, %14 : vector<16x128xi32>
    %16 = arith.xori %13, %15 : vector<16x128xi32>
    %c2146121005_i32 = arith.constant 2146121005 : i32
    %17 = vector.broadcast %c2146121005_i32 : i32 to vector<16x128xi32>
    %18 = arith.muli %16, %17 : vector<16x128xi32>
    %c15_i32 = arith.constant 15 : i32
    %19 = vector.broadcast %c15_i32 : i32 to vector<16x128xi32>
    %20 = arith.shrui %18, %19 : vector<16x128xi32>
    %21 = arith.xori %18, %20 : vector<16x128xi32>
    %c-2073254261_i32 = arith.constant -2073254261 : i32
    %22 = vector.broadcast %c-2073254261_i32 : i32 to vector<16x128xi32>
    %23 = arith.muli %21, %22 : vector<16x128xi32>
    %c16_i32_0 = arith.constant 16 : i32
    %24 = vector.broadcast %c16_i32_0 : i32 to vector<16x128xi32>
    %25 = arith.shrui %23, %24 : vector<16x128xi32>
    %26 = arith.xori %23, %25 : vector<16x128xi32>
    %27 = vector.extract_strided_slice %26 {offsets = [0, 0], sizes = [8, 128], strides = [1, 1]} : vector<16x128xi32> to vector<8x128xi32>
    %c9_i32 = arith.constant 9 : i32
    %28 = vector.broadcast %c9_i32 : i32 to vector<8x128xi32>
    %29 = arith.shrui %27, %28 : vector<8x128xi32>
    %30 = arith.sitofp %29 : vector<8x128xi32> to vector<8x128xf32>
    %cst = arith.constant 1.1920929E-7 : f32
    %31 = vector.broadcast %cst : f32 to vector<8x128xf32>
    %32 = arith.mulf %30, %31 : vector<8x128xf32>
    %cst_1 = arith.constant 5.96046448E-8 : f32
    %33 = vector.broadcast %cst_1 : f32 to vector<8x128xf32>
    %34 = arith.addf %32, %33 : vector<8x128xf32>
    %35 = vector.extract_strided_slice %26 {offsets = [8, 0], sizes = [8, 128], strides = [1, 1]} : vector<16x128xi32> to vector<8x128xi32>
    %c9_i32_2 = arith.constant 9 : i32
    %36 = vector.broadcast %c9_i32_2 : i32 to vector<8x128xi32>
    %37 = arith.shrui %35, %36 : vector<8x128xi32>
    %38 = arith.sitofp %37 : vector<8x128xi32> to vector<8x128xf32>
    %cst_3 = arith.constant 1.1920929E-7 : f32
    %39 = vector.broadcast %cst_3 : f32 to vector<8x128xf32>
    %40 = arith.mulf %38, %39 : vector<8x128xf32>
    %cst_4 = arith.constant 5.96046448E-8 : f32
    %41 = vector.broadcast %cst_4 : f32 to vector<8x128xf32>
    %42 = arith.addf %40, %41 : vector<8x128xf32>
    %43 = math.log %34 : vector<8x128xf32>
    %cst_5 = arith.constant -2.000000e+00 : f32
    %44 = vector.broadcast %cst_5 : f32 to vector<8x128xf32>
    %45 = arith.mulf %44, %43 : vector<8x128xf32>
    %46 = math.sqrt %45 : vector<8x128xf32>
    %cst_6 = arith.constant 6.28318548 : f32
    %47 = vector.broadcast %cst_6 : f32 to vector<8x128xf32>
    %48 = arith.mulf %47, %42 : vector<8x128xf32>
    %49 = math.cos %48 : vector<8x128xf32>
    %50 = arith.mulf %46, %49 : vector<8x128xf32>
    %51 = math.sin %48 : vector<8x128xf32>
    %52 = arith.mulf %46, %51 : vector<8x128xf32>
    %c0_7 = arith.constant 0 : index
    %c0_8 = arith.constant 0 : index
    %53 = vector.load %arg2[%c0_7, %c0_8] : memref<16x128xf32, #tpu.memory_space<vmem>>, vector<8x128xf32>
    %cst_9 = arith.constant 5.000000e+00 : f32
    %54 = vector.broadcast %cst_9 : f32 to vector<8x128xf32>
    %55 = arith.mulf %54, %50 : vector<8x128xf32>
    %cst_10 = arith.constant 0.000000e+00 : f32
    %56 = vector.broadcast %cst_10 : f32 to vector<8x128xf32>
    %57 = arith.addf %56, %55 : vector<8x128xf32>
    %58 = arith.addf %53, %57 : vector<8x128xf32>
    %c0_11 = arith.constant 0 : index
    %c0_12 = arith.constant 0 : index
    %59 = vector.load %arg3[%c0_11, %c0_12] : memref<16x128xf32, #tpu.memory_space<vmem>>, vector<8x128xf32>
    tpu.vector_store %arg3[%c0_11, %c0_12], %58 {strides = array<i32>} : memref<16x128xf32, #tpu.memory_space<vmem>>, vector<8x128xf32>,
    %c8 = arith.constant 8 : index
    %c0_13 = arith.constant 0 : index
    %60 = vector.load %arg2[%c8, %c0_13] : memref<16x128xf32, #tpu.memory_space<vmem>>, vector<8x128xf32>
    %cst_14 = arith.constant 5.000000e+00 : f32
    %61 = vector.broadcast %cst_14 : f32 to vector<8x128xf32>
    %62 = arith.mulf %61, %52 : vector<8x128xf32>
    %cst_15 = arith.constant 0.000000e+00 : f32
    %63 = vector.broadcast %cst_15 : f32 to vector<8x128xf32>
    %64 = arith.addf %63, %62 : vector<8x128xf32>
    %65 = arith.addf %60, %64 : vector<8x128xf32>
    %c8_16 = arith.constant 8 : index
    %c0_17 = arith.constant 0 : index
    %66 = vector.load %arg3[%c8_16, %c0_17] : memref<16x128xf32, #tpu.memory_space<vmem>>, vector<8x128xf32>
    tpu.vector_store %arg3[%c8_16, %c0_17], %65 {strides = array<i32>} : memref<16x128xf32, #tpu.memory_space<vmem>>, vector<8x128xf32>,
    return
  }
  func.func @transform_0(%arg0: i32, %arg1: memref<1xi32, #tpu.memory_space<smem>>) -> (i32, i32) {
    %c0_i32 = arith.constant 0 : i32
    %c0_i32_0 = arith.constant 0 : i32
    return %arg0, %c0_i32 : i32, i32
  }
  func.func @transform_1(%arg0: i32, %arg1: memref<1xi32, #tpu.memory_space<smem>>) -> (i32, i32) {
    %c0_i32 = arith.constant 0 : i32
    %c0_i32_0 = arith.constant 0 : i32
    return %arg0, %c0_i32 : i32, i32
  }
}

</mosaic_0001>

<bundles_post_ra>
// kernel: tpu_custom_call.1
= control target key start
LH: loop header
LB: loop body
LE: loop exit
PB: predicated region body
PF: predicated region fallthrough
CT: control target
= control target key end

     0   :  { %8 = vsyncpa [#allocation5], 0  ;;  %s451_s0 = inlined_call_operand.<no memory space> [shape: s32[1], index: 0, kind: input, shape index: {}]   ;;  %s452_s1 = inlined_call_operand.hbm [shape: f32[16,128], index: 1, kind: input, shape index: {}]   ;;  %s453_s2 = inlined_call_operand.hbm [shape: f32[16,128], index: 2, kind: output, shape index: {}]  }
   0x1   :  { %9 = vsyncpa [#allocation6], 0  ;;  %s390_s9 = smov [#allocation4]  }
   0x2   :  { %s15_s10 = sshll.u32 %s390_s9, 4  ;;  %s16_s10 = int_to_ptr.vmem [resolvable:$true] %s15_s10 }
   0x3   :  { %s354_s11 = scalar_lea.vmem %s16_s10, 256  ;;  %p359_p1 = scmp.lt.s32.totalorder %s16_s10, %s16_s10 }
   0x4   :  { %p355_p0 = scmp.ne.s32.totalorder %s16_s10, %s354_s11  ;;  %p360_p2 = scmp.lt.s32.totalorder %s354_s11, %s354_s11 }
   0x6   :  { %p361_p3 = por %p360_p2, %p359_p1 }
   0x8   :  { %p362_p4 = pnand %p361_p3, %p355_p0 }
   0xa   :  { %365 = shalt.err (!%p362_p4)
}
   0xb   :  { %s391_s12 = smov 128   ;;  %s392_s13 = smov 8  }
   0xc   :  { %21 = dma.hbm_to_vmem [thread:$0]  %s452_s1, 256, %s16_s10, [#allocation5], %s391_s12, %s391_s12, %s392_s13  }
   0xd   :  { %386 = dma.done.wait [#allocation5], 256  }
   0xe   :  { %387 = vsyncadd [#allocation5], 4294967040  ;;  %v26_v0 = vlaneseq  ;;  %s41_s18 = smul.u32 2246822519, %s451_s0  ;;  %v393_v44 = vmov 683565275  }
   0xf   :  { %v394_v46 = vmov 2475754826   ;;  %v395_v48 = vmov 2131351028   ;;  %v396_v51 = vmov 2102212464  }
  0x10   :  { %v27_v1 = vshrl.u32 %v26_v0, 7  ;;  %v30_v3 = vand.u32 127, %v26_v0  ;;  %v42_v6 = vstv %s41_s18  ;;  %v397_v53 = vmov 920167782   ;;  %s399_s0 = smov [#allocation7]  }
  0x11   :  { %v398_v60 = vmov 1326507024   ;;  %s304_s1 = sshll.u32 %s399_s0, 4  ;;  %s305_s1 = int_to_ptr.vmem [resolvable:$true] %s304_s1 }
  0x12   :  { %v28_v2 = vadd.s32 8, %v27_v1  ;;  %v31_v7 = vmul.u32 128, %v27_v1  ;;  %s366_s19 = scalar_lea.vmem %s305_s1, 256  ;;  %p371_p6 = scmp.lt.s32.totalorder %s305_s1, %s305_s1 }
  0x13   :  { %p367_p5 = scmp.ne.s32.totalorder %s305_s1, %s366_s19  ;;  %p372_p7 = scmp.lt.s32.totalorder %s366_s19, %s366_s19 }
  0x14   :  { %v32_v4 = vmul.u32 128, %v28_v2  ;;  %v33_v10 = vadd.s32 %v31_v7, %v30_v3 }
  0x15   :  { %p373_p8 = por %p372_p7, %p371_p6 }
  0x16   :  { %v34_v5 = vadd.s32 %v32_v4, %v30_v3  ;;  %v39_v13 = vmul.u32 2654435761, %v33_v10 }
  0x17   :  { %p374_p9 = pnand %p373_p8, %p367_p5 }
  0x18   :  { %v40_v8 = vmul.u32 2654435761, %v34_v5  ;;  %v43_v16 = vadd.s32 %v42_v6, %v39_v13 }
  0x1a   :  { %v44_v9 = vadd.s32 %v42_v6, %v40_v8  ;;  %v45_v19 = vshrl.u32 %v43_v16, 16 }
  0x1c   :  { %v46_v11 = vshrl.u32 %v44_v9, 16  ;;  %v47_v22 = vxor.u32 %v45_v19, %v43_v16 }
  0x1e   :  { %v48_v12 = vxor.u32 %v46_v11, %v44_v9  ;;  %v49_v25 = vmul.u32 2146121005, %v47_v22 }
  0x20   :  { %v50_v14 = vmul.u32 2146121005, %v48_v12  ;;  %v51_v28 = vshrl.u32 %v49_v25, 15 }
  0x22   :  { %v52_v15 = vshrl.u32 %v50_v14, 15  ;;  %v53_v31 = vxor.u32 %v51_v28, %v49_v25 }
  0x24   :  { %v54_v17 = vxor.u32 %v52_v15, %v50_v14  ;;  %v55_v35 = vmul.u32 2221713035, %v53_v31 }
  0x26   :  { %v56_v18 = vmul.u32 2221713035, %v54_v17  ;;  %v57_v39 = vshrl.u32 %v55_v35, 16 }
  0x28   :  { %v58_v20 = vshrl.u32 %v56_v18, 16  ;;  %v59_v50 = vxor.u32 %v57_v39, %v55_v35 }
  0x2a   :  { %v60_v21 = vxor.u32 %v58_v20, %v56_v18  ;;  %v61_v8 = vshrl.u32 %v59_v50, 9 }
  0x2c   :  { %v65_v23 = vshrl.u32 %v60_v21, 9  ;;  %v62_v21 = vcvt.s32.f32 %v61_v8 }
  0x2e   :  { %v66_v24 = vcvt.s32.f32 %v65_v23 }
  0x30   :  { %v67_v26 = vmul.f32 1.1920929e-07, %v66_v24  ;;  %v63_v24 = vmul.f32 1.1920929e-07, %v62_v21 }
  0x32   :  { %v68_v27 = vadd.f32 5.9604645e-08, %v67_v26 }
  0x34   :  { %v424_v29 = vmul.f32 6.2831855, %v68_v27  ;;  %v64_v27 = vadd.f32 5.9604645e-08, %v63_v24 }
  0x36   :  { %v83_v30 = vand.u32 2139095040, %v424_v29  ;;  %v80_v33 = vand.u32 2147483647, %v424_v29  ;;  %338 = vlog2.f32 %v64_v27  ;;  %vm82_vm7 = vcmp.lt.s32.totalorder %v424_v29, 0 }
  0x38   :  { %v84_v32 = vshrl.u32 %v83_v30, 23  ;;  %v87_v37 = vand.u32 8388607, %v80_v33  ;;  %vm81_vm8 = vcmp.le.f32.partialorder %v80_v33, 0.7853982 }
  0x3a   :  { %v316_v34 = vadd.s32 4294967169, %v84_v32  ;;  %v88_v41 = vor.u32 8388608, %v87_v37 }
  0x3c   :  { %v90_v36 = vadd.s32 1, %v316_v34  ;;  %v128_v62 = vshll.u32 %v88_v41, 8 }
  0x3e   :  { %vm91_vm0 = vcmp.gt.s32.totalorder %v90_v36, 0 }
  0x3f   :  { %v92_v38 = vsel %vm91_vm0, %v90_v36, 0 }
  0x40   :  { %v94_v40 = vand.u32 31, %v92_v38  ;;  %v93_v42 = vshrl.u32 %v92_v38, 5 }
  0x42   :  { %v95_v43 = vsub.s32 32, %v94_v40  ;;  %v97_v45 = vshll.u32 %v393_v44, %v94_v40  ;;  %v100_v47 = vshll.u32 %v394_v46, %v94_v40  ;;  %v103_v49 = vshll.u32 %v395_v48, %v94_v40 }
  0x43   :  { %v106_v52 = vshll.u32 %v396_v51, %v94_v40  ;;  %v109_v54 = vshll.u32 %v397_v53, %v94_v40  ;;  %vm112_vm1 = vcmp.lt.s32.totalorder %v93_v42, 1  ;;  %vm115_vm2 = vcmp.lt.s32.totalorder %v93_v42, 4  ;;  %v339_v39 = vpop.eup %338 }
  0x44   :  { %v96_v55 = vshrl.u32 %v393_v44, %v95_v43  ;;  %v98_v56 = vshrl.u32 %v394_v46, %v95_v43  ;;  %v101_v57 = vshrl.u32 %v395_v48, %v95_v43  ;;  %v104_v58 = vshrl.u32 %v396_v51, %v95_v43 }
  0x45   :  { %v107_v59 = vshrl.u32 %v397_v53, %v95_v43  ;;  %v110_v61 = vshrl.u32 %v398_v60, %v95_v43  ;;  %vm113_vm3 = vcmp.lt.s32.totalorder %v93_v42, 2  ;;  %vm114_vm4 = vcmp.lt.s32.totalorder %v93_v42, 3 }
  0x46   :  { %v99_v63 = vor.u32 %v98_v56, %v97_v45  ;;  %v102_v0 = vor.u32 %v101_v57, %v100_v47  ;;  %v105_v1 = vor.u32 %v104_v58, %v103_v49  ;;  %v70_v44 = vmul.f32 0.6931472, %v339_v39 }
  0x47   :  { %v108_v2 = vor.u32 %v107_v59, %v106_v52  ;;  %v111_v3 = vor.u32 %v110_v61, %v109_v54 }
  0x48   :  { %v116_v4 = vsel %vm112_vm1, %v96_v55, %v99_v63  ;;  %v117_v5 = vsel %vm115_vm2, %v105_v1, 2102212464  ;;  %v120_v6 = vsel %vm112_vm1, %v99_v63, %v102_v0  ;;  %v124_v7 = vsel %vm112_vm1, %v102_v0, %v105_v1 }
  0x49   :  { %v118_v9 = vsel %vm114_vm4, %v102_v0, %v117_v5  ;;  %v121_v10 = vsel %vm115_vm2, %v108_v2, 920167782  ;;  %v125_v11 = vsel %vm115_vm2, %v111_v3, 1326507024  ;;  %v71_v49 = vmul.f32 -2.0, %v70_v44 }
  0x4a   :  { %v122_v12 = vsel %vm114_vm4, %v105_v1, %v121_v10  ;;  %v126_v13 = vsel %vm114_vm4, %v108_v2, %v125_v11  ;;  %v119_v14 = vsel %vm113_vm3, %v116_v4, %v118_v9  ;;  %vm172_vm1 = vweird.f32 %v424_v29 }
  0x4b   :  { %v123_v15 = vsel %vm113_vm3, %v120_v6, %v122_v12  ;;  %v127_v16 = vsel %vm113_vm3, %v124_v7, %v126_v13  ;;  %v135_v22 = vmul.u32 %v128_v62, %v119_v14  ;;  %340 = vrsqrt.f32 %v71_v49 }
  0x4c   :  { %v430_v17 = vmul.u32.u64.low %v128_v62, %v127_v16  ;;  %v431_v18 = vmul.u32.u64.high %v128_v62, %v127_v16, %v430_v17  ;;  %v433_v19 = vmul.u32.u64.low %v128_v62, %v123_v15  ;;  %v434_v20 = vmul.u32.u64.high %v128_v62, %v123_v15, %v433_v19 }
  0x4d   :  { %vm74_vm9 = vcmp.eq.f32.partialorder %v71_v49, inf  ;;  %vm76_vm10 = vcmp.eq.f32.partialorder %v71_v49, 0.0  ;;  %v77_v2 = vand.u32 2147483648, %v71_v49  ;;  %v289_v17 = vld [vmem:[#allocation4] sm:$0xff] }
  0x4e   :  { %vm137_vm5 = vc.u32 %v431_v18, %v433_v19  ;;  %v138_v23 = vadd.s32 1, %v434_v20  ;;  %v136_v38 = vadd.s32 %v433_v19, %v431_v18  ;;  %v294_v18 = vld [vmem:[#allocation4 + $0x8] sm:$0xff] }
  0x50   :  { %v139_v25 = vsel %vm137_vm5, %v138_v23, %v434_v20 }
  0x51   :  { %v140_v26 = vadd.s32 %v139_v25, %v135_v22 }
  0x53   :  { %v141_v28 = vadd.s32 536870912, %v140_v26 }
  0x55   :  { %v142_v30 = vshrl.u32 %v141_v28, 30 }
  0x57   :  { %v143_v31 = vshll.u32 %v142_v30, 30  ;;  %v166_v54 = vsub.s32 4, %v142_v30 }
  0x58   :  { %v341_v61 = vpop.eup %340 }
  0x59   :  { %v144_v32 = vsub.s32 %v140_v26, %v143_v31  ;;  %v167_v57 = vsel %vm82_vm7, %v166_v54, %v142_v30  ;;  %v73_v0 = vmul.f32 %v341_v61, %v71_v49 }
  0x5a   :  { %v169_v59 = vsel %vm81_vm8, 0, %v167_v57 }
  0x5b   :  { %v146_v34 = vsub.s32 0, %v144_v32  ;;  %v277_v60 = vadd.s32 3, %v169_v59  ;;  %v173_v62 = vand.u32 3, %v169_v59  ;;  %v75_v3 = vsel %vm74_vm9, %v71_v49, %v73_v0 }
  0x5c   :  { %v78_v8 = vsel %vm76_vm10, %v77_v2, %v75_v3 }
  0x5d   :  { %v317_v35 = vmin.u32 %v146_v34, %v144_v32  ;;  %v278_v63 = vand.u32 3, %v277_v60  ;;  %vm178_vm11 = vcmp.eq.s32.totalorder %v173_v62, 2  ;;  %vm175_vm13 = vcmp.eq.s32.totalorder %v173_v62, 0 }
  0x5e   :  { %vm174_vm15 = vcmp.lt.s32.totalorder %v173_v62, 2 }
  0x5f   :  { %v148_v36 = vclz %v317_v35  ;;  %vm283_vm12 = vcmp.eq.s32.totalorder %v278_v63, 2  ;;  %vm280_vm14 = vcmp.eq.s32.totalorder %v278_v63, 0  ;;  %vm279_vm0 = vcmp.lt.s32.totalorder %v278_v63, 2 }
  0x61   :  { %v318_v37 = vadd.s32 4294967294, %v148_v36 }
  0x63   :  { %vm319_vm6 = vcmp.lt.s32.totalorder %v318_v37, 0 }
  0x64   :  { %v151_v40 = vsel %vm319_vm6, 0, %v318_v37 }
  0x65   :  { %v152_v41 = vsub.s32 32, %v151_v40  ;;  %v153_v42 = vshll.u32 %v144_v32, %v151_v40  ;;  %v156_v43 = vsub.s32 4294967266, %v151_v40 }
  0x67   :  { %v154_v45 = vshrl.u32 %v136_v38, %v152_v41  ;;  %v157_v46 = vadd.s32 127, %v156_v43 }
  0x69   :  { %v155_v47 = vor.u32 %v154_v45, %v153_v42  ;;  %v158_v48 = vshll.u32 %v157_v46, 23 }
  0x6b   :  { %v159_v50 = vor.u32 4788187, %v158_v48  ;;  %v162_v51 = vcvt.s32.f32 %v155_v47 }
  0x6d   :  { %v160_v52 = vand.u32 2147483647, %v159_v50 }
  0x6f   :  { %v163_v53 = vmul.f32 %v162_v51, %v160_v52 }
  0x71   :  { %v164_v55 = vxor.u32 2147483648, %v163_v53 }
  0x73   :  { %v165_v56 = vsel %vm82_vm7, %v164_v55, %v163_v53 }
  0x74   :  { %v168_v58 = vsel %vm81_vm8, %v424_v29, %v165_v56 }
  0x75   :  { %342 = vcosq.f32 %v168_v58 }
  0x76   :  { %344 = vsinq.f32 %v168_v58 }
  0x82   :  { %v343_v1 = vpop.eup %342 }
  0x83   :  { %v345_v33 = vpop.eup %344  ;;  %v179_v4 = vxor.u32 2147483648, %v343_v1 }
  0x84   :  { %v176_v5 = vxor.u32 2147483648, %v345_v33 }
  0x85   :  { %v180_v6 = vsel %vm178_vm11, %v179_v4, %v345_v33  ;;  %v285_v7 = vsel %vm283_vm12, %v179_v4, %v345_v33 }
  0x86   :  { %v177_v9 = vsel %vm175_vm13, %v343_v1, %v176_v5  ;;  %v282_v10 = vsel %vm280_vm14, %v343_v1, %v176_v5 }
  0x87   :  { %v181_v11 = vsel %vm174_vm15, %v177_v9, %v180_v6  ;;  %v286_v12 = vsel %vm279_vm0, %v282_v10, %v285_v7 }
  0x88   :  { %v182_v13 = vsel %vm172_vm1, nan, %v181_v11  ;;  %v287_v14 = vsel %vm172_vm1, nan, %v286_v12 }
  0x89   :  { %v183_v15 = vmul.f32 %v182_v13, %v78_v8  ;;  %v288_v16 = vmul.f32 %v287_v14, %v78_v8 }
  0x8b   :  { %v290_v19 = vmul.f32 5.0, %v183_v15  ;;  %v295_v20 = vmul.f32 5.0, %v288_v16 }
  0x8d   :  { %v292_v21 = vadd.f32 %v290_v19, %v289_v17  ;;  %v297_v22 = vadd.f32 %v295_v20, %v294_v18 }
  0x8f   :  { %293 = vst [vmem:[#allocation7] sm:$0xff] %v292_v21  ;;  %298 = vst [vmem:[#allocation7 + $0x8] sm:$0xff] %v297_v22 }
  0x90   :  { %377 = shalt.err (!%p374_p9)
}
  0x91   :  { %310 = dma.vmem_to_hbm [thread:$0]  %s305_s1, 256, %s453_s2, [#allocation6], %s391_s12, %s391_s12, %s392_s13  }
  0x92   :  { %388 = dma.done.wait [#allocation6], 256  }
  0x93   :  { %389 = vsyncadd [#allocation6], 4294967040 }
  0x94   :  { %314 = vsyncpa [#allocation5], 1 }
  0x95   :  { %315 = vsyncpa [#allocation6], 1 }

</bundles_post_ra>
